<compile_context>
chip_gen: v5e
topology: v5e:2x2
jax: 0.10.0
libtpu: 0.0.40
codegen_flags: <defaults>
</compile_context>

<pallas_src>
import functools

import jax
import jax.numpy as jnp
from jax.experimental import pallas as pl
from jax.experimental.pallas import tpu as pltpu

_NEG = -1e30                      # bias pad for padded class columns (exp -> 0 in f32)
_VMEM_LIMIT = 48 * 1024 * 1024    # <= ~48 MiB keeps headroom on v7x (64 MiB physical)


def _round_up(x, m):
    return ((x + m - 1) // m) * m


def _pick_tile(n):
    # bigger tiles -> fewer ~0.35us grid steps and larger adj DMAs
    if n >= 2048:
        return 512
    if n >= 512:
        return 256
    return 128


def _pad2(a, rows, cols, fill=0.0):
    return jnp.pad(a, ((0, rows - a.shape[0]), (0, cols - a.shape[1])),
                   constant_values=fill)


# ---------------------------------------------------------------------------
# Kernel 0:  H = X @ Wᵀ + b          (fc1, row-tiled, computed once per node)
# ---------------------------------------------------------------------------
def fc_kernel(x_ref, wt_ref, b_ref, h_ref):
    h = jnp.dot(x_ref[...], wt_ref[...], preferred_element_type=jnp.float32)
    h_ref[...] = (h + b_ref[...]).astype(h_ref.dtype)


# ---------------------------------------------------------------------------
# Kernel A:  H2 = relu(adj @ H1) @ W2ᵀ + b2     (aggregation + relu + fused fc2)
#   adj : (T, T) bf16 tile at (i, k)      h1 : (np_, h1p) bf16, VMEM-resident
#   acc : (T, h1p) f32 accumulator across k
# ---------------------------------------------------------------------------
def agg_relu_fc_kernel(adj_ref, h_ref, wt_ref, b_ref, out_ref, acc_ref):
    k = pl.program_id(1)

    @pl.when(k == 0)
    def _():
        acc_ref[...] = jnp.zeros_like(acc_ref)

    tk = adj_ref.shape[1]
    start = pl.multiple_of(k * tk, tk)
    acc_ref[...] += jnp.dot(adj_ref[...], h_ref[pl.ds(start, tk), :],
                            preferred_element_type=jnp.float32)

    @pl.when(k == pl.num_programs(1) - 1)
    def _():
        z0 = jnp.maximum(acc_ref[...], 0.0)          # relu; dropout = identity (eval)
        # TODO(synk): training-mode dropout on Z0 would use pltpu.prng_seed +
        # pltpu.stateful_bernoulli here, between the relu and the fused fc2.
        h2 = jnp.dot(z0.astype(jnp.bfloat16), wt_ref[...],
                     preferred_element_type=jnp.float32) + b_ref[...]
        out_ref[...] = h2.astype(out_ref.dtype)


# ---------------------------------------------------------------------------
# Kernel B:  Z1 = relu(adj @ H2);  logp = log_softmax(Z1 @ W3ᵀ + b3)
# ---------------------------------------------------------------------------
def agg_relu_head_kernel(adj_ref, h_ref, w3t_ref, b3_ref,
                         logp_ref, z1_ref, acc_ref):
    k = pl.program_id(1)

    @pl.when(k == 0)
    def _():
        acc_ref[...] = jnp.zeros_like(acc_ref)

    tk = adj_ref.shape[1]
    start = pl.multiple_of(k * tk, tk)
    acc_ref[...] += jnp.dot(adj_ref[...], h_ref[pl.ds(start, tk), :],
                            preferred_element_type=jnp.float32)

    @pl.when(k == pl.num_programs(1) - 1)
    def _():
        z1 = jnp.maximum(acc_ref[...], 0.0)
        z1_ref[...] = z1.astype(z1_ref.dtype)
        # fc3 + numerically stable log_softmax (f32; padded class cols carry -1e30
        # bias so exp() contributes exactly 0).
        logits = jnp.dot(z1.astype(jnp.bfloat16), w3t_ref[...],
                         preferred_element_type=jnp.float32) + b3_ref[...]
        m = jnp.max(logits, axis=1, keepdims=True)
        lse = jnp.log(jnp.sum(jnp.exp(logits - m), axis=1, keepdims=True)) + m
        logp_ref[...] = (logits - lse).astype(logp_ref.dtype)


# ---------------------------------------------------------------------------
# pallas_call wrappers
# ---------------------------------------------------------------------------
def _adj_spec(tile, n_k):
    # Deeper adj buffering hides DMA jitter once the FC is hoisted; keep the
    # default double-buffering for shallow k-grids.
    if n_k >= 3:
        return pl.BlockSpec((tile, tile), lambda i, k: (i, k),
                            pipeline_mode=pl.Buffered(3))
    return pl.BlockSpec((tile, tile), lambda i, k: (i, k))


def _fc_pass(x_p, wt, b, tile):
    np_, fp = x_p.shape
    hp = wt.shape[1]
    return pl.pallas_call(
        fc_kernel,
        grid=(np_ // tile,),
        in_specs=[
            pl.BlockSpec((tile, fp), lambda i: (i, 0)),
            pl.BlockSpec((fp, hp), lambda i: (0, 0)),
            pl.BlockSpec((1, hp), lambda i: (0, 0)),
        ],
        out_specs=pl.BlockSpec((tile, hp), lambda i: (i, 0)),
        out_shape=jax.ShapeDtypeStruct((np_, hp), jnp.bfloat16),
        compiler_params=pltpu.CompilerParams(
            dimension_semantics=("parallel",),
            vmem_limit_bytes=_VMEM_LIMIT),
    )(x_p, wt, b)


def _agg_fc_pass(adj_p, h1, w2t, b2, tile):
    np_ = adj_p.shape[0]
    h1p = h1.shape[1]
    h2p = w2t.shape[1]
    n_row = np_ // tile
    n_k = np_ // tile
    cost = pl.CostEstimate(
        flops=2 * np_ * np_ * h1p + 2 * np_ * h1p * h2p,
        transcendentals=0,
        bytes_accessed=(np_ * np_ * 2 + np_ * (h1p + h2p) * 2
                        + h1p * h2p * 2 + h2p * 4))
    return pl.pallas_call(
        agg_relu_fc_kernel,
        grid=(n_row, n_k),
        in_specs=[
            _adj_spec(tile, n_k),                            # adj tile (i, k)
            pl.BlockSpec((np_, h1p), lambda i, k: (0, 0)),   # H1 (VMEM-resident)
            pl.BlockSpec((h1p, h2p), lambda i, k: (0, 0)),   # W2ᵀ (invariant)
            pl.BlockSpec((1, h2p), lambda i, k: (0, 0)),     # b2
        ],
        out_specs=pl.BlockSpec((tile, h2p), lambda i, k: (i, 0)),
        out_shape=jax.ShapeDtypeStruct((np_, h2p), jnp.bfloat16),
        scratch_shapes=[pltpu.VMEM((tile, h1p), jnp.float32)],
        compiler_params=pltpu.CompilerParams(
            dimension_semantics=("parallel", "arbitrary"),
            vmem_limit_bytes=_VMEM_LIMIT),
        cost_estimate=cost,
    )(adj_p, h1, w2t, b2)


def _agg_head_pass(adj_p, h2, w3t, b3, tile):
    np_ = adj_p.shape[0]
    h2p = h2.shape[1]
    cp = w3t.shape[1]
    n_row = np_ // tile
    n_k = np_ // tile
    cost = pl.CostEstimate(
        flops=2 * np_ * np_ * h2p + 2 * np_ * h2p * cp,
        transcendentals=np_ * cp,
        bytes_accessed=(np_ * np_ * 2 + np_ * h2p * 2
                        + np_ * (cp * 4 + h2p * 2) + h2p * cp * 2 + cp * 4))
    return pl.pallas_call(
        agg_relu_head_kernel,
        grid=(n_row, n_k),
        in_specs=[
            _adj_spec(tile, n_k),                            # adj tile (i, k)
            pl.BlockSpec((np_, h2p), lambda i, k: (0, 0)),   # H2 (VMEM-resident)
            pl.BlockSpec((h2p, cp), lambda i, k: (0, 0)),    # W3ᵀ (invariant)
            pl.BlockSpec((1, cp), lambda i, k: (0, 0)),      # b3 (pad = -1e30)
        ],
        out_specs=(
            pl.BlockSpec((tile, cp), lambda i, k: (i, 0)),   # logp
            pl.BlockSpec((tile, h2p), lambda i, k: (i, 0)),  # z1
        ),
        out_shape=(
            jax.ShapeDtypeStruct((np_, cp), jnp.float32),
            jax.ShapeDtypeStruct((np_, h2p), jnp.bfloat16),
        ),
        scratch_shapes=[pltpu.VMEM((tile, h2p), jnp.float32)],
        compiler_params=pltpu.CompilerParams(
            dimension_semantics=("parallel", "arbitrary"),
            vmem_limit_bytes=_VMEM_LIMIT),
        cost_estimate=cost,
    )(adj_p, h2, w3t, b3)


# ---------------------------------------------------------------------------
# One-off preprocessing (kept OUT of the per-forward path on purpose)
# ---------------------------------------------------------------------------
def prepare_adj(adj):
    """Pad adj to a tile-aligned square and cast to bf16 once (adj is static)."""
    n = adj.shape[0]
    tile = _pick_tile(n)
    np_ = _round_up(n, tile)
    return _pad2(adj, np_, np_).astype(jnp.bfloat16), tile


def prepare_params(w1, b1, w2, b2, w3, b3):
    """Pre-transpose weights to [in, out], pad to lane multiples, cast to bf16."""
    fp = _round_up(w1.shape[1], 128)
    h1p = _round_up(w1.shape[0], 128)
    h2p = _round_up(w2.shape[0], 128)
    cp = _round_up(w3.shape[0], 128)
    w1t = _pad2(w1.T, fp, h1p).astype(jnp.bfloat16)
    w2t = _pad2(w2.T, h1p, h2p).astype(jnp.bfloat16)
    w3t = _pad2(w3.T, h2p, cp).astype(jnp.bfloat16)
    b1p = _pad2(b1.reshape(1, -1), 1, h1p).astype(jnp.float32)
    b2p = _pad2(b2.reshape(1, -1), 1, h2p).astype(jnp.float32)
    b3p = _pad2(b3.reshape(1, -1), 1, cp, fill=_NEG).astype(jnp.float32)
    return w1t, b1p, w2t, b2p, w3t, b3p


@functools.partial(jax.jit, static_argnames=("tile", "n_class", "n_hidden_2"))
def gnn_forward(x_in, adj_p, w1t, b1, w2t, b2, w3t, b3, *,
                tile, n_class, n_hidden_2):
    n = x_in.shape[0]
    np_ = adj_p.shape[0]
    fp = w1t.shape[0]

    x_p = _pad2(x_in, np_, fp).astype(jnp.bfloat16)

    # fc1, hoisted: computed exactly once per node (not once per row tile).
    h1 = _fc_pass(x_p, w1t, b1, tile)
    # relu(adj @ H1) -> fused fc2  (dropout is the identity in eval mode).
    h2 = _agg_fc_pass(adj_p, h1, w2t, b2, tile)
    # relu(adj @ H2) -> fused fc3 + log_softmax.
    logp_p, z1_p = _agg_head_pass(adj_p, h2, w3t, b3, tile)

    # slice lane/row padding back off
    return logp_p[:n, :n_class], z1_p[:n, :n_hidden_2]


def init_linear(key, out_features, in_features):
    """Deterministic PyTorch-Linear-style init: U(-1/sqrt(in), 1/sqrt(in))."""
    kw, kb = jax.random.split(key)
    bound = 1.0 / jnp.sqrt(jnp.float32(in_features))
    w = jax.random.uniform(kw, (out_features, in_features), jnp.float32, -bound, bound)
    b = jax.random.uniform(kb, (1, out_features), jnp.float32, -bound, bound)
    return w, b


if __name__ == "__main__":
    # Small shapes: N=8 nodes, n_feat=16, n_hidden_1=32, n_hidden_2=32, n_class=8
    N, n_feat, n_hidden_1, n_hidden_2, n_class = 8, 16, 32, 32, 8

    key = jax.random.PRNGKey(0)
    k_x, k_adj, k1, k2, k3 = jax.random.split(key, 5)

    x_in = jax.random.normal(k_x, (N, n_feat), jnp.float32)
    # symmetric, row-normalized adjacency (dense)
    a = jax.random.uniform(k_adj, (N, N), jnp.float32)
    adj = (a + a.T) * 0.5 + jnp.eye(N, dtype=jnp.float32)
    adj = adj / jnp.sum(adj, axis=1, keepdims=True)

    w1, b1 = init_linear(k1, n_hidden_1, n_feat)
    w2, b2 = init_linear(k2, n_hidden_2, n_hidden_1)
    w3, b3 = init_linear(k3, n_class, n_hidden_2)

    # One-off preprocessing (adj pad/cast + weight transpose/pad) done outside
    # the per-forward jit -- adjacency/weights are static across forwards.
    adj_p, tile = prepare_adj(adj)
    params = prepare_params(w1, b1, w2, b2, w3, b3)

    logp, z1 = gnn_forward(x_in, adj_p, *params,
                           tile=tile, n_class=n_class, n_hidden_2=n_hidden_2)
    jax.block_until_ready((logp, z1))

    # Pure-JAX f32 reference (kernel uses bf16 MXU operands -> relaxed tolerance)
    z0_ref = jnp.maximum(adj @ (x_in @ w1.T + b1), 0.0)
    z1_ref = jnp.maximum(adj @ (z0_ref @ w2.T + b2), 0.0)
    logits_ref = z1_ref @ w3.T + b3
    logp_ref = logits_ref - jax.scipy.special.logsumexp(logits_ref, axis=1,
                                                        keepdims=True)

    assert logp.shape == (N, n_class) and z1.shape == (N, n_hidden_2)
    assert jnp.allclose(z1.astype(jnp.float32), z1_ref, atol=5e-2, rtol=5e-2), \
        "Z_1 mismatch"
    assert jnp.allclose(logp, logp_ref, atol=5e-2, rtol=5e-2), "log_softmax mismatch"

    print("KERNEL_OK")
</pallas_src>

<mosaic_0001>
module attributes {stable_mosaic.version = 11 : i64} {
  func.func @fc_kernel(%arg0: i32, %arg1: memref<128x128xbf16, #tpu.memory_space<vmem>>, %arg2: memref<128x128xbf16, #tpu.memory_space<vmem>>, %arg3: memref<1x128xf32, #tpu.memory_space<vmem>>, %arg4: memref<128x128xbf16, #tpu.memory_space<vmem>>) attributes {dimension_semantics = [#tpu.dimension_semantics<parallel>], iteration_bounds = array<i64: 1>, scalar_prefetch = 0 : i64, scratch_operands = 0 : i64, tpu.core_type = #tpu.core_type<tc>, window_params = [{transform_indices = @transform_0, window_bounds = array<i64: 128, 128>}, {pipeline_mode = #tpu.pipeline_mode<synchronous>, transform_indices = @transform_1, window_bounds = array<i64: 128, 128>}, {pipeline_mode = #tpu.pipeline_mode<synchronous>, transform_indices = @transform_2, window_bounds = array<i64: 1, 128>}, {transform_indices = @transform_3, window_bounds = array<i64: 128, 128>}]} {
    %c0 = arith.constant 0 : index
    %c0_0 = arith.constant 0 : index
    %0 = vector.load %arg1[%c0, %c0_0] : memref<128x128xbf16, #tpu.memory_space<vmem>>, vector<128x128xbf16>
    %c0_1 = arith.constant 0 : index
    %c0_2 = arith.constant 0 : index
    %1 = vector.load %arg2[%c0_1, %c0_2] : memref<128x128xbf16, #tpu.memory_space<vmem>>, vector<128x128xbf16>
    %cst = arith.constant dense<0.000000e+00> : vector<128x128xf32>
    %2 = tpu.matmul %0, %1, %cst {dimension_numbers = #tpu.dot_dimension_numbers<[1], [0], [0], [1], [0, 0, 1, 1], [], []>} : vector<128x128xbf16>, vector<128x128xbf16>, vector<128x128xf32> -> vector<128x128xf32>
    %c0_3 = arith.constant 0 : index
    %c0_4 = arith.constant 0 : index
    %3 = vector.load %arg3[%c0_3, %c0_4] : memref<1x128xf32, #tpu.memory_space<vmem>>, vector<1x128xf32>
    %4 = vector.broadcast %3 : vector<1x128xf32> to vector<128x128xf32>
    %5 = arith.addf %2, %4 : vector<128x128xf32>
    %6 = arith.truncf %5 : vector<128x128xf32> to vector<128x128xbf16>
    %c0_5 = arith.constant 0 : index
    %c0_6 = arith.constant 0 : index
    %7 = vector.load %arg4[%c0_5, %c0_6] : memref<128x128xbf16, #tpu.memory_space<vmem>>, vector<128x128xbf16>
    tpu.vector_store %arg4[%c0_5, %c0_6], %6 {strides = array<i32>} : memref<128x128xbf16, #tpu.memory_space<vmem>>, vector<128x128xbf16>,
    return
  }
  func.func @transform_0(%arg0: i32) -> (i32, i32) {
    %c0_i32 = arith.constant 0 : i32
    %c0_i32_0 = arith.constant 0 : i32
    return %arg0, %c0_i32 : i32, i32
  }
  func.func @transform_1(%arg0: i32) -> (i32, i32) {
    %c0_i32 = arith.constant 0 : i32
    %c0_i32_0 = arith.constant 0 : i32
    %c0_i32_1 = arith.constant 0 : i32
    return %c0_i32, %c0_i32_0 : i32, i32
  }
  func.func @transform_2(%arg0: i32) -> (i32, i32) {
    %c0_i32 = arith.constant 0 : i32
    %c0_i32_0 = arith.constant 0 : i32
    %c0_i32_1 = arith.constant 0 : i32
    return %c0_i32, %c0_i32_0 : i32, i32
  }
  func.func @transform_3(%arg0: i32) -> (i32, i32) {
    %c0_i32 = arith.constant 0 : i32
    %c0_i32_0 = arith.constant 0 : i32
    return %arg0, %c0_i32 : i32, i32
  }
}

module attributes {stable_mosaic.version = 11 : i64} {
  func.func @agg_relu_fc_kernel(%arg0: i32, %arg1: i32, %arg2: memref<128x128xbf16, #tpu.memory_space<vmem>>, %arg3: memref<128x128xbf16, #tpu.memory_space<vmem>>, %arg4: memref<128x128xbf16, #tpu.memory_space<vmem>>, %arg5: memref<1x128xf32, #tpu.memory_space<vmem>>, %arg6: memref<128x128xbf16, #tpu.memory_space<vmem>>, %arg7: memref<128x128xf32, #tpu.memory_space<vmem>>) attributes {dimension_semantics = [#tpu.dimension_semantics<parallel>, #tpu.dimension_semantics<arbitrary>], iteration_bounds = array<i64: 1, 1>, scalar_prefetch = 0 : i64, scratch_operands = 1 : i64, tpu.core_type = #tpu.core_type<tc>, window_params = [{transform_indices = @transform_0, window_bounds = array<i64: 128, 128>}, {pipeline_mode = #tpu.pipeline_mode<synchronous>, transform_indices = @transform_1, window_bounds = array<i64: 128, 128>}, {pipeline_mode = #tpu.pipeline_mode<synchronous>, transform_indices = @transform_2, window_bounds = array<i64: 128, 128>}, {pipeline_mode = #tpu.pipeline_mode<synchronous>, transform_indices = @transform_3, window_bounds = array<i64: 1, 128>}, {transform_indices = @transform_4, window_bounds = array<i64: 128, 128>}]} {
    %c0_i32 = arith.constant 0 : i32
    %0 = arith.cmpi eq, %arg1, %c0_i32 : i32
    %1 = arith.extui %0 : i1 to i32
    %c0_i32_0 = arith.constant 0 : i32
    %2 = arith.cmpi ne, %1, %c0_i32_0 : i32
    scf.if %2 {
      %cst_9 = arith.constant 0.000000e+00 : f32
      %15 = vector.broadcast %cst_9 : f32 to vector<128x128xf32>
      %c0_10 = arith.constant 0 : index
      %c0_11 = arith.constant 0 : index
      %16 = vector.load %arg7[%c0_10, %c0_11] : memref<128x128xf32, #tpu.memory_space<vmem>>, vector<128x128xf32>
      tpu.vector_store %arg7[%c0_10, %c0_11], %15 {strides = array<i32>} : memref<128x128xf32, #tpu.memory_space<vmem>>, vector<128x128xf32>,
    } else {
    }
    %c128_i32 = arith.constant 128 : i32
    %3 = arith.muli %arg1, %c128_i32 : i32
    %4 = tpu.assume_multiple %3, 128 : i32
    %c0 = arith.constant 0 : index
    %c0_1 = arith.constant 0 : index
    %5 = vector.load %arg7[%c0, %c0_1] : memref<128x128xf32, #tpu.memory_space<vmem>>, vector<128x128xf32>
    %c0_2 = arith.constant 0 : index
    %c0_3 = arith.constant 0 : index
    %6 = vector.load %arg2[%c0_2, %c0_3] : memref<128x128xbf16, #tpu.memory_space<vmem>>, vector<128x128xbf16>
    %7 = arith.index_cast %4 : i32 to index
    %c0_4 = arith.constant 0 : index
    %8 = vector.load %arg3[%7, %c0_4] : memref<128x128xbf16, #tpu.memory_space<vmem>>, vector<128x128xbf16>
    %cst = arith.constant dense<0.000000e+00> : vector<128x128xf32>
    %9 = tpu.matmul %6, %8, %cst {dimension_numbers = #tpu.dot_dimension_numbers<[1], [0], [0], [1], [0, 0, 1, 1], [], []>} : vector<128x128xbf16>, vector<128x128xbf16>, vector<128x128xf32> -> vector<128x128xf32>
    %10 = arith.addf %5, %9 : vector<128x128xf32>
    %c0_5 = arith.constant 0 : index
    %c0_6 = arith.constant 0 : index
    %11 = vector.load %arg7[%c0_5, %c0_6] : memref<128x128xf32, #tpu.memory_space<vmem>>, vector<128x128xf32>
    tpu.vector_store %arg7[%c0_5, %c0_6], %10 {strides = array<i32>} : memref<128x128xf32, #tpu.memory_space<vmem>>, vector<128x128xf32>,
    %c0_i32_7 = arith.constant 0 : i32
    %12 = arith.cmpi eq, %arg1, %c0_i32_7 : i32
    %13 = arith.extui %12 : i1 to i32
    %c0_i32_8 = arith.constant 0 : i32
    %14 = arith.cmpi ne, %13, %c0_i32_8 : i32
    scf.if %14 {
      %c0_9 = arith.constant 0 : index
      %c0_10 = arith.constant 0 : index
      %15 = vector.load %arg7[%c0_9, %c0_10] : memref<128x128xf32, #tpu.memory_space<vmem>>, vector<128x128xf32>
      %cst_11 = arith.constant 0.000000e+00 : f32
      %16 = vector.broadcast %cst_11 : f32 to vector<128x128xf32>
      %17 = arith.maximumf %15, %16 : vector<128x128xf32>
      %18 = arith.truncf %17 : vector<128x128xf32> to vector<128x128xbf16>
      %c0_12 = arith.constant 0 : index
      %c0_13 = arith.constant 0 : index
      %19 = vector.load %arg4[%c0_12, %c0_13] : memref<128x128xbf16, #tpu.memory_space<vmem>>, vector<128x128xbf16>
      %cst_14 = arith.constant dense<0.000000e+00> : vector<128x128xf32>
      %20 = tpu.matmul %18, %19, %cst_14 {dimension_numbers = #tpu.dot_dimension_numbers<[1], [0], [0], [1], [0, 0, 1, 1], [], []>} : vector<128x128xbf16>, vector<128x128xbf16>, vector<128x128xf32> -> vector<128x128xf32>
      %c0_15 = arith.constant 0 : index
      %c0_16 = arith.constant 0 : index
      %21 = vector.load %arg5[%c0_15, %c0_16] : memref<1x128xf32, #tpu.memory_space<vmem>>, vector<1x128xf32>
      %22 = vector.broadcast %21 : vector<1x128xf32> to vector<128x128xf32>
      %23 = arith.addf %20, %22 : vector<128x128xf32>
      %24 = arith.truncf %23 : vector<128x128xf32> to vector<128x128xbf16>
      %c0_17 = arith.constant 0 : index
      %c0_18 = arith.constant 0 : index
      %25 = vector.load %arg6[%c0_17, %c0_18] : memref<128x128xbf16, #tpu.memory_space<vmem>>, vector<128x128xbf16>
      tpu.vector_store %arg6[%c0_17, %c0_18], %24 {strides = array<i32>} : memref<128x128xbf16, #tpu.memory_space<vmem>>, vector<128x128xbf16>,
    } else {
    }
    return
  }
  func.func @transform_0(%arg0: i32, %arg1: i32) -> (i32, i32) {
    %c0_i32 = arith.constant 0 : i32
    return %arg0, %arg1 : i32, i32
  }
  func.func @transform_1(%arg0: i32, %arg1: i32) -> (i32, i32) {
    %c0_i32 = arith.constant 0 : i32
    %c0_i32_0 = arith.constant 0 : i32
    %c0_i32_1 = arith.constant 0 : i32
    return %c0_i32, %c0_i32_0 : i32, i32
  }
  func.func @transform_2(%arg0: i32, %arg1: i32) -> (i32, i32) {
    %c0_i32 = arith.constant 0 : i32
    %c0_i32_0 = arith.constant 0 : i32
    %c0_i32_1 = arith.constant 0 : i32
    return %c0_i32, %c0_i32_0 : i32, i32
  }
  func.func @transform_3(%arg0: i32, %arg1: i32) -> (i32, i32) {
    %c0_i32 = arith.constant 0 : i32
    %c0_i32_0 = arith.constant 0 : i32
    %c0_i32_1 = arith.constant 0 : i32
    return %c0_i32, %c0_i32_0 : i32, i32
  }
  func.func @transform_4(%arg0: i32, %arg1: i32) -> (i32, i32) {
    %c0_i32 = arith.constant 0 : i32
    %c0_i32_0 = arith.constant 0 : i32
    return %arg0, %c0_i32 : i32, i32
  }
}

module attributes {stable_mosaic.version = 11 : i64} {
  func.func @agg_relu_head_kernel(%arg0: i32, %arg1: i32, %arg2: memref<128x128xbf16, #tpu.memory_space<vmem>>, %arg3: memref<128x128xbf16, #tpu.memory_space<vmem>>, %arg4: memref<128x128xbf16, #tpu.memory_space<vmem>>, %arg5: memref<1x128xf32, #tpu.memory_space<vmem>>, %arg6: memref<128x128xf32, #tpu.memory_space<vmem>>, %arg7: memref<128x128xbf16, #tpu.memory_space<vmem>>, %arg8: memref<128x128xf32, #tpu.memory_space<vmem>>) attributes {dimension_semantics = [#tpu.dimension_semantics<parallel>, #tpu.dimension_semantics<arbitrary>], iteration_bounds = array<i64: 1, 1>, scalar_prefetch = 0 : i64, scratch_operands = 1 : i64, tpu.core_type = #tpu.core_type<tc>, window_params = [{transform_indices = @transform_0, window_bounds = array<i64: 128, 128>}, {pipeline_mode = #tpu.pipeline_mode<synchronous>, transform_indices = @transform_1, window_bounds = array<i64: 128, 128>}, {pipeline_mode = #tpu.pipeline_mode<synchronous>, transform_indices = @transform_2, window_bounds = array<i64: 128, 128>}, {pipeline_mode = #tpu.pipeline_mode<synchronous>, transform_indices = @transform_3, window_bounds = array<i64: 1, 128>}, {transform_indices = @transform_4, window_bounds = array<i64: 128, 128>}, {transform_indices = @transform_5, window_bounds = array<i64: 128, 128>}]} {
    %c0_i32 = arith.constant 0 : i32
    %0 = arith.cmpi eq, %arg1, %c0_i32 : i32
    %1 = arith.extui %0 : i1 to i32
    %c0_i32_0 = arith.constant 0 : i32
    %2 = arith.cmpi ne, %1, %c0_i32_0 : i32
    scf.if %2 {
      %cst_9 = arith.constant 0.000000e+00 : f32
      %15 = vector.broadcast %cst_9 : f32 to vector<128x128xf32>
      %c0_10 = arith.constant 0 : index
      %c0_11 = arith.constant 0 : index
      %16 = vector.load %arg8[%c0_10, %c0_11] : memref<128x128xf32, #tpu.memory_space<vmem>>, vector<128x128xf32>
      tpu.vector_store %arg8[%c0_10, %c0_11], %15 {strides = array<i32>} : memref<128x128xf32, #tpu.memory_space<vmem>>, vector<128x128xf32>,
    } else {
    }
    %c128_i32 = arith.constant 128 : i32
    %3 = arith.muli %arg1, %c128_i32 : i32
    %4 = tpu.assume_multiple %3, 128 : i32
    %c0 = arith.constant 0 : index
    %c0_1 = arith.constant 0 : index
    %5 = vector.load %arg8[%c0, %c0_1] : memref<128x128xf32, #tpu.memory_space<vmem>>, vector<128x128xf32>
    %c0_2 = arith.constant 0 : index
    %c0_3 = arith.constant 0 : index
    %6 = vector.load %arg2[%c0_2, %c0_3] : memref<128x128xbf16, #tpu.memory_space<vmem>>, vector<128x128xbf16>
    %7 = arith.index_cast %4 : i32 to index
    %c0_4 = arith.constant 0 : index
    %8 = vector.load %arg3[%7, %c0_4] : memref<128x128xbf16, #tpu.memory_space<vmem>>, vector<128x128xbf16>
    %cst = arith.constant dense<0.000000e+00> : vector<128x128xf32>
    %9 = tpu.matmul %6, %8, %cst {dimension_numbers = #tpu.dot_dimension_numbers<[1], [0], [0], [1], [0, 0, 1, 1], [], []>} : vector<128x128xbf16>, vector<128x128xbf16>, vector<128x128xf32> -> vector<128x128xf32>
    %10 = arith.addf %5, %9 : vector<128x128xf32>
    %c0_5 = arith.constant 0 : index
    %c0_6 = arith.constant 0 : index
    %11 = vector.load %arg8[%c0_5, %c0_6] : memref<128x128xf32, #tpu.memory_space<vmem>>, vector<128x128xf32>
    tpu.vector_store %arg8[%c0_5, %c0_6], %10 {strides = array<i32>} : memref<128x128xf32, #tpu.memory_space<vmem>>, vector<128x128xf32>,
    %c0_i32_7 = arith.constant 0 : i32
    %12 = arith.cmpi eq, %arg1, %c0_i32_7 : i32
    %13 = arith.extui %12 : i1 to i32
    %c0_i32_8 = arith.constant 0 : i32
    %14 = arith.cmpi ne, %13, %c0_i32_8 : i32
    scf.if %14 {
      %c0_9 = arith.constant 0 : index
      %c0_10 = arith.constant 0 : index
      %15 = vector.load %arg8[%c0_9, %c0_10] : memref<128x128xf32, #tpu.memory_space<vmem>>, vector<128x128xf32>
      %cst_11 = arith.constant 0.000000e+00 : f32
      %16 = vector.broadcast %cst_11 : f32 to vector<128x128xf32>
      %17 = arith.maximumf %15, %16 : vector<128x128xf32>
      %18 = arith.truncf %17 : vector<128x128xf32> to vector<128x128xbf16>
      %c0_12 = arith.constant 0 : index
      %c0_13 = arith.constant 0 : index
      %19 = vector.load %arg7[%c0_12, %c0_13] : memref<128x128xbf16, #tpu.memory_space<vmem>>, vector<128x128xbf16>
      tpu.vector_store %arg7[%c0_12, %c0_13], %18 {strides = array<i32>} : memref<128x128xbf16, #tpu.memory_space<vmem>>, vector<128x128xbf16>,
      %20 = arith.truncf %17 : vector<128x128xf32> to vector<128x128xbf16>
      %c0_14 = arith.constant 0 : index
      %c0_15 = arith.constant 0 : index
      %21 = vector.load %arg4[%c0_14, %c0_15] : memref<128x128xbf16, #tpu.memory_space<vmem>>, vector<128x128xbf16>
      %cst_16 = arith.constant dense<0.000000e+00> : vector<128x128xf32>
      %22 = tpu.matmul %20, %21, %cst_16 {dimension_numbers = #tpu.dot_dimension_numbers<[1], [0], [0], [1], [0, 0, 1, 1], [], []>} : vector<128x128xbf16>, vector<128x128xbf16>, vector<128x128xf32> -> vector<128x128xf32>
      %c0_17 = arith.constant 0 : index
      %c0_18 = arith.constant 0 : index
      %23 = vector.load %arg5[%c0_17, %c0_18] : memref<1x128xf32, #tpu.memory_space<vmem>>, vector<1x128xf32>
      %24 = vector.broadcast %23 : vector<1x128xf32> to vector<128x128xf32>
      %25 = arith.addf %22, %24 : vector<128x128xf32>
      %cst_19 = arith.constant dense<0xFF800000> : vector<128xf32>
      %26 = vector.multi_reduction <maximumf>, %25, %cst_19 [1] : vector<128x128xf32> to vector<128xf32>
      %27 = vector.shape_cast %26 : vector<128xf32> to vector<128x1xf32>
      %28 = vector.broadcast %27 : vector<128x1xf32> to vector<128x128xf32>
      %29 = arith.subf %25, %28 : vector<128x128xf32>
      %30 = math.exp %29 : vector<128x128xf32>
      %cst_20 = arith.constant dense<0.000000e+00> : vector<128xf32>
      %31 = vector.multi_reduction <add>, %30, %cst_20 [1] : vector<128x128xf32> to vector<128xf32>
      %32 = vector.shape_cast %31 : vector<128xf32> to vector<128x1xf32>
      %33 = math.log %32 : vector<128x1xf32>
      %34 = arith.addf %33, %27 : vector<128x1xf32>
      %35 = vector.broadcast %34 : vector<128x1xf32> to vector<128x128xf32>
      %36 = arith.subf %25, %35 : vector<128x128xf32>
      %c0_21 = arith.constant 0 : index
      %c0_22 = arith.constant 0 : index
      %37 = vector.load %arg6[%c0_21, %c0_22] : memref<128x128xf32, #tpu.memory_space<vmem>>, vector<128x128xf32>
      tpu.vector_store %arg6[%c0_21, %c0_22], %36 {strides = array<i32>} : memref<128x128xf32, #tpu.memory_space<vmem>>, vector<128x128xf32>,
    } else {
    }
    return
  }
  func.func @transform_0(%arg0: i32, %arg1: i32) -> (i32, i32) {
    %c0_i32 = arith.constant 0 : i32
    return %arg0, %arg1 : i32, i32
  }
  func.func @transform_1(%arg0: i32, %arg1: i32) -> (i32, i32) {
    %c0_i32 = arith.constant 0 : i32
    %c0_i32_0 = arith.constant 0 : i32
    %c0_i32_1 = arith.constant 0 : i32
    return %c0_i32, %c0_i32_0 : i32, i32
  }
  func.func @transform_2(%arg0: i32, %arg1: i32) -> (i32, i32) {
    %c0_i32 = arith.constant 0 : i32
    %c0_i32_0 = arith.constant 0 : i32
    %c0_i32_1 = arith.constant 0 : i32
    return %c0_i32, %c0_i32_0 : i32, i32
  }
  func.func @transform_3(%arg0: i32, %arg1: i32) -> (i32, i32) {
    %c0_i32 = arith.constant 0 : i32
    %c0_i32_0 = arith.constant 0 : i32
    %c0_i32_1 = arith.constant 0 : i32
    return %c0_i32, %c0_i32_0 : i32, i32
  }
  func.func @transform_4(%arg0: i32, %arg1: i32) -> (i32, i32) {
    %c0_i32 = arith.constant 0 : i32
    %c0_i32_0 = arith.constant 0 : i32
    return %arg0, %c0_i32 : i32, i32
  }
  func.func @transform_5(%arg0: i32, %arg1: i32) -> (i32, i32) {
    %c0_i32 = arith.constant 0 : i32
    %c0_i32_0 = arith.constant 0 : i32
    return %arg0, %c0_i32 : i32, i32
  }
}

</mosaic_0001>

<bundles_post_ra>
// kernel: gnn_forward.3
= control target key start
LH: loop header
LB: loop body
LE: loop exit
PB: predicated region body
PF: predicated region fallthrough
CT: control target
= control target key end

     0   :  { %8 = vsyncpa [#allocation3], 0  ;;  %s429_s15 = smov [#allocation2]   ;;  %s430_s17 = smov 64   ;;  %s506_s0 = inlined_call_operand.vmem [shape: bf16[128,128], index: 0, kind: input, shape index: {}]   ;;  %s507_s1 = inlined_call_operand.hbm [shape: bf16[128,128], index: 1, kind: input, shape index: {}]   ;;  %s508_s2 = inlined_call_operand.vmem [shape: f32[1,128], index: 2, kind: input, shape index: {}]   ;;  %s509_s3 = inlined_call_operand.vmem [shape: bf16[128,128], index: 3, kind: output, shape index: {}]  }
   0x1   :  { %s15_s14 = sshll.u32 %s507_s1, 4  ;;  %s17_s16 = sshll.u32 %s429_s15, 4  ;;  %s16_s14 = int_to_ptr.hbm [resolvable:$true] %s15_s14  ;;  %s18_s16 = int_to_ptr.vmem [resolvable:$true] %s17_s16 }
   0x2   :  { %s431_s18 = smov 4  }
   0x3   :  { %23 = dma.hbm_to_vmem [thread:$0]  %s16_s14, 1024, %s18_s16, [#allocation3], %s430_s17, %s430_s17, %s431_s18  }
   0x4   :  { %427 = dma.done.wait [#allocation3], 1024  }
   0x5   :  { %428 = vsyncadd [#allocation3], 4294966272  ;;  %v327_v0 = vld [vmem:[#allocation2 + $0x38] sm:$0xff]  ;;  %v326_v1 = vld [vmem:[#allocation2 + $0x30] sm:$0xff] }
   0x6   :  { %162 = vmatpush.bf16.msra.mxu0 %v327_v0  ;;  %375 = vmatpush.bf16.msra.mxu1 %v327_v0  ;;  %v325_v2 = vld [vmem:[#allocation2 + $0x28] sm:$0xff]  ;;  %v324_v3 = vld [vmem:[#allocation2 + $0x20] sm:$0xff]  ;;  %v323_v4 = vld [vmem:[#allocation2 + $0x18] sm:$0xff] }
   0x7   :  { %376 = vmatpush.bf16.msra.mxu2 %v327_v0  ;;  %377 = vmatpush.bf16.msra.mxu3 %v327_v0  ;;  %v322_v5 = vld [vmem:[#allocation2 + $0x10] sm:$0xff]  ;;  %v321_v6 = vld [vmem:[#allocation2 + $0x8] sm:$0xff]  ;;  %v320_v7 = vld [vmem:[#allocation2] sm:$0xff] }
   0x8   :  { %v312_v8 = vld [vmem:[%s506_s0] sm:$0xff]  ;;  %v314_v9 = vld [vmem:[%s506_s0 + $0x10] sm:$0xff]  ;;  %v313_v12 = vld [vmem:[%s506_s0 + $0x8] sm:$0xff] }
   0x9   :  { %v316_v10 = vld [vmem:[%s506_s0 + $0x20] sm:$0xff]  ;;  %v318_v11 = vld [vmem:[%s506_s0 + $0x30] sm:$0xff]  ;;  %v315_v13 = vld [vmem:[%s506_s0 + $0x18] sm:$0xff] }
   0xa   :  { %163 = vmatpush.bf16.msra.mxu0 %v326_v1  ;;  %378 = vmatpush.bf16.msra.mxu1 %v326_v1  ;;  %v317_v14 = vld [vmem:[%s506_s0 + $0x28] sm:$0xff]  ;;  %v319_v15 = vld [vmem:[%s506_s0 + $0x38] sm:$0xff]  ;;  %v402_v18 = vld [vmem:[%s508_s2] ss:$0 sm:$0xff] }
   0xb   :  { %379 = vmatpush.bf16.msra.mxu2 %v326_v1  ;;  %380 = vmatpush.bf16.msra.mxu3 %v326_v1 }
   0xe   :  { %164 = vmatpush.bf16.msra.mxu0 %v325_v2  ;;  %381 = vmatpush.bf16.msra.mxu1 %v325_v2 }
   0xf   :  { %382 = vmatpush.bf16.msra.mxu2 %v325_v2  ;;  %383 = vmatpush.bf16.msra.mxu3 %v325_v2 }
  0x12   :  { %165 = vmatpush.bf16.msra.mxu0 %v324_v3  ;;  %384 = vmatpush.bf16.msra.mxu1 %v324_v3 }
  0x13   :  { %385 = vmatpush.bf16.msra.mxu2 %v324_v3  ;;  %386 = vmatpush.bf16.msra.mxu3 %v324_v3 }
  0x16   :  { %166 = vmatpush.bf16.msra.mxu0 %v323_v4  ;;  %387 = vmatpush.bf16.msra.mxu1 %v323_v4 }
  0x17   :  { %388 = vmatpush.bf16.msra.mxu2 %v323_v4  ;;  %389 = vmatpush.bf16.msra.mxu3 %v323_v4 }
  0x1a   :  { %167 = vmatpush.bf16.msra.mxu0 %v322_v5  ;;  %390 = vmatpush.bf16.msra.mxu1 %v322_v5 }
  0x1b   :  { %391 = vmatpush.bf16.msra.mxu2 %v322_v5  ;;  %392 = vmatpush.bf16.msra.mxu3 %v322_v5 }
  0x1e   :  { %168 = vmatpush.bf16.msra.mxu0 %v321_v6  ;;  %393 = vmatpush.bf16.msra.mxu1 %v321_v6 }
  0x1f   :  { %394 = vmatpush.bf16.msra.mxu2 %v321_v6  ;;  %395 = vmatpush.bf16.msra.mxu3 %v321_v6 }
  0x22   :  { %169 = vmatpush.bf16.msra.mxu0 %v320_v7  ;;  %396 = vmatpush.bf16.msra.mxu1 %v320_v7 }
  0x23   :  { %397 = vmatpush.bf16.msra.mxu2 %v320_v7  ;;  %398 = vmatpush.bf16.msra.mxu3 %v320_v7 }
  0x25   :  { %170 = vmatmul.bf16.vlgmr.msra.gmra.mxu0 %v312_v8  ;;  %180 = vmatmul.bf16.vlgmr.msra.gmra.mxu1 %v314_v9 }
  0x26   :  { %190 = vmatmul.bf16.vlgmr.msra.gmra.mxu2 %v316_v10  ;;  %200 = vmatmul.bf16.vlgmr.msra.gmra.mxu3 %v318_v11 }
  0x35   :  { %175 = vmatmul.bf16.gmra.mxu0 %v313_v12  ;;  %185 = vmatmul.bf16.gmra.mxu1 %v315_v13 }
  0x36   :  { %195 = vmatmul.bf16.gmra.mxu2 %v317_v14  ;;  %205 = vmatmul.bf16.gmra.mxu3 %v319_v15 }
  0xa2   :  { %v171_v16 = vpop.f32.mrf.mxu0  ;;  %v181_v17 = vpop.f32.mrf.mxu1 }
  0xa3   :  { %v172_v23 = vadd.f32 %v402_v18, %v171_v16  ;;  %v182_v24 = vadd.f32 %v402_v18, %v181_v17 }
  0xa9   :  { %v191_v19 = vpop.f32.mrf.mxu2  ;;  %v201_v20 = vpop.f32.mrf.mxu3 }
  0xaa   :  { %v173_v21 = vpop.f32.mrf.mxu0  ;;  %v183_v22 = vpop.f32.mrf.mxu1  ;;  %v192_v31 = vadd.f32 %v402_v18, %v191_v19  ;;  %v202_v32 = vadd.f32 %v402_v18, %v201_v20 }
  0xab   :  { %v174_v25 = vadd.f32 %v402_v18, %v173_v21  ;;  %v184_v26 = vadd.f32 %v402_v18, %v183_v22 }
  0xad   :  { %v331_v27 = vpack.c.bf16 %v174_v25, %v172_v23  ;;  %v341_v28 = vpack.c.bf16 %v184_v26, %v182_v24 }
  0xaf   :  { %332 = vst [vmem:[%s509_s3] sm:$0xff] %v331_v27  }
  0xb0   :  { %369 = vst [vmem:[%s509_s3 + $0x10] sm:$0xff] %v341_v28  }
  0xb1   :  { %v193_v29 = vpop.f32.mrf.mxu2  ;;  %v203_v30 = vpop.f32.mrf.mxu3 }
  0xb2   :  { %v194_v33 = vadd.f32 %v402_v18, %v193_v29  ;;  %v204_v34 = vadd.f32 %v402_v18, %v203_v30  ;;  %v176_v35 = vpop.f32.mrf.mxu0  ;;  %v186_v36 = vpop.f32.mrf.mxu1 }
  0xb3   :  { %v177_v43 = vadd.f32 %v402_v18, %v176_v35  ;;  %v187_v44 = vadd.f32 %v402_v18, %v186_v36 }
  0xb4   :  { %v351_v37 = vpack.c.bf16 %v194_v33, %v192_v31  ;;  %v361_v38 = vpack.c.bf16 %v204_v34, %v202_v32 }
  0xb6   :  { %371 = vst [vmem:[%s509_s3 + $0x20] sm:$0xff] %v351_v37  }
  0xb7   :  { %373 = vst [vmem:[%s509_s3 + $0x30] sm:$0xff] %v361_v38  }
  0xb9   :  { %v196_v39 = vpop.f32.mrf.mxu2  ;;  %v206_v40 = vpop.f32.mrf.mxu3 }
  0xba   :  { %v178_v41 = vpop.f32.mrf.mxu0  ;;  %v188_v42 = vpop.f32.mrf.mxu1  ;;  %v197_v51 = vadd.f32 %v402_v18, %v196_v39  ;;  %v207_v52 = vadd.f32 %v402_v18, %v206_v40 }
  0xbb   :  { %v179_v45 = vadd.f32 %v402_v18, %v178_v41  ;;  %v189_v46 = vadd.f32 %v402_v18, %v188_v42 }
  0xbd   :  { %v336_v47 = vpack.c.bf16 %v179_v45, %v177_v43  ;;  %v346_v48 = vpack.c.bf16 %v189_v46, %v187_v44 }
  0xbf   :  { %368 = vst [vmem:[%s509_s3 + $0x8] sm:$0xff] %v336_v47  }
  0xc0   :  { %370 = vst [vmem:[%s509_s3 + $0x18] sm:$0xff] %v346_v48  }
  0xc1   :  { %v198_v49 = vpop.f32.mrf.mxu2  ;;  %v208_v50 = vpop.f32.mrf.mxu3 }
  0xc2   :  { %v199_v53 = vadd.f32 %v402_v18, %v198_v49  ;;  %v209_v54 = vadd.f32 %v402_v18, %v208_v50 }
  0xc4   :  { %v356_v55 = vpack.c.bf16 %v199_v53, %v197_v51  ;;  %v366_v56 = vpack.c.bf16 %v209_v54, %v207_v52 }
  0xc6   :  { %372 = vst [vmem:[%s509_s3 + $0x28] sm:$0xff] %v356_v55  }
  0xc7   :  { %374 = vst [vmem:[%s509_s3 + $0x38] sm:$0xff] %v366_v56  }
  0xc8   :  { %247 = vsyncpa [#allocation3], 1 }

// kernel: gnn_forward.4
= control target key start
LH: loop header
LB: loop body
LE: loop exit
PB: predicated region body
PF: predicated region fallthrough
CT: control target
= control target key end

     0   :  { %9 = vsyncpa [#allocation4], 0  ;;  %s695_s18 = smov [#allocation3]   ;;  %s696_s20 = smov 64   ;;  %s801_s0 = inlined_call_operand.vmem [shape: bf16[128,128], index: 0, kind: input, shape index: {}]   ;;  %s802_s1 = inlined_call_operand.vmem [shape: bf16[128,128], index: 1, kind: input, shape index: {}]   ;;  %s803_s2 = inlined_call_operand.hbm [shape: bf16[128,128], index: 2, kind: input, shape index: {}]   ;;  %s804_s3 = inlined_call_operand.vmem [shape: f32[1,128], index: 3, kind: input, shape index: {}]   ;;  %s805_s4 = inlined_call_operand.vmem [shape: bf16[128,128], index: 4, kind: output, shape index: {}]  }
   0x1   :  { %s18_s17 = sshll.u32 %s803_s2, 4  ;;  %s20_s19 = sshll.u32 %s695_s18, 4  ;;  %s19_s17 = int_to_ptr.hbm [resolvable:$true] %s18_s17  ;;  %s21_s19 = int_to_ptr.vmem [resolvable:$true] %s20_s19 }
   0x2   :  { %s697_s21 = smov 4  }
   0x3   :  { %26 = dma.hbm_to_vmem [thread:$0]  %s19_s17, 1024, %s21_s19, [#allocation4], %s696_s20, %s696_s20, %s697_s21  }
   0x4   :  { %693 = dma.done.wait [#allocation4], 1024  }
   0x5   :  { %694 = vsyncadd [#allocation4], 4294966272  ;;  %v593_v0 = vld [vmem:[%s802_s1 + $0x38] sm:$0xff]  ;;  %v592_v1 = vld [vmem:[%s802_s1 + $0x30] sm:$0xff] }
   0x6   :  { %202 = vmatpush.bf16.msra.mxu0 %v593_v0  ;;  %649 = vmatpush.bf16.msra.mxu2 %v593_v0  ;;  %v591_v2 = vld [vmem:[%s802_s1 + $0x28] sm:$0xff]  ;;  %v590_v3 = vld [vmem:[%s802_s1 + $0x20] sm:$0xff]  ;;  %v589_v4 = vld [vmem:[%s802_s1 + $0x18] sm:$0xff] }
   0x7   :  { %v588_v5 = vld [vmem:[%s802_s1 + $0x10] sm:$0xff]  ;;  %v587_v6 = vld [vmem:[%s802_s1 + $0x8] sm:$0xff]  ;;  %v586_v7 = vld [vmem:[%s802_s1] sm:$0xff] }
   0x8   :  { %v578_v8 = vld [vmem:[%s801_s0] sm:$0xff]  ;;  %v579_v10 = vld [vmem:[%s801_s0 + $0x8] sm:$0xff]  ;;  %v601_v12 = vld [vmem:[#allocation3 + $0x38] sm:$0xff] }
   0x9   :  { %v582_v9 = vld [vmem:[%s801_s0 + $0x20] sm:$0xff]  ;;  %v583_v11 = vld [vmem:[%s801_s0 + $0x28] sm:$0xff]  ;;  %394 = vmatpush.bf16.msra.mxu1 %v601_v12  ;;  %v600_v13 = vld [vmem:[#allocation3 + $0x30] sm:$0xff]  ;;  %657 = vmatpush.bf16.msra.mxu3 %v601_v12 }
   0xa   :  { %203 = vmatpush.bf16.msra.mxu0 %v592_v1  ;;  %650 = vmatpush.bf16.msra.mxu2 %v592_v1  ;;  %v599_v14 = vld [vmem:[#allocation3 + $0x28] sm:$0xff]  ;;  %v598_v15 = vld [vmem:[#allocation3 + $0x20] sm:$0xff]  ;;  %v580_v16 = vld [vmem:[%s801_s0 + $0x10] sm:$0xff] }
   0xb   :  { %v584_v17 = vld [vmem:[%s801_s0 + $0x30] sm:$0xff]  ;;  %v597_v18 = vld [vmem:[#allocation3 + $0x18] sm:$0xff]  ;;  %v595_v22 = vld [vmem:[#allocation3 + $0x8] sm:$0xff] }
   0xc   :  { %v581_v19 = vld [vmem:[%s801_s0 + $0x18] sm:$0xff]  ;;  %v596_v21 = vld [vmem:[#allocation3 + $0x10] sm:$0xff]  ;;  %v594_v23 = vld [vmem:[#allocation3] sm:$0xff] }
   0xd   :  { %395 = vmatpush.bf16.msra.mxu1 %v600_v13  ;;  %658 = vmatpush.bf16.msra.mxu3 %v600_v13  ;;  %v585_v20 = vld [vmem:[%s801_s0 + $0x38] sm:$0xff]  ;;  %v668_v1 = vld [vmem:[%s804_s3] ss:$0 sm:$0xff] }
   0xe   :  { %204 = vmatpush.bf16.msra.mxu0 %v591_v2  ;;  %651 = vmatpush.bf16.msra.mxu2 %v591_v2 }
  0x11   :  { %396 = vmatpush.bf16.msra.mxu1 %v599_v14  ;;  %659 = vmatpush.bf16.msra.mxu3 %v599_v14 }
  0x12   :  { %205 = vmatpush.bf16.msra.mxu0 %v590_v3  ;;  %652 = vmatpush.bf16.msra.mxu2 %v590_v3 }
  0x15   :  { %397 = vmatpush.bf16.msra.mxu1 %v598_v15  ;;  %660 = vmatpush.bf16.msra.mxu3 %v598_v15 }
  0x16   :  { %206 = vmatpush.bf16.msra.mxu0 %v589_v4  ;;  %653 = vmatpush.bf16.msra.mxu2 %v589_v4 }
  0x19   :  { %398 = vmatpush.bf16.msra.mxu1 %v597_v18  ;;  %661 = vmatpush.bf16.msra.mxu3 %v597_v18 }
  0x1a   :  { %207 = vmatpush.bf16.msra.mxu0 %v588_v5  ;;  %654 = vmatpush.bf16.msra.mxu2 %v588_v5 }
  0x1d   :  { %399 = vmatpush.bf16.msra.mxu1 %v596_v21  ;;  %662 = vmatpush.bf16.msra.mxu3 %v596_v21 }
  0x1e   :  { %208 = vmatpush.bf16.msra.mxu0 %v587_v6  ;;  %655 = vmatpush.bf16.msra.mxu2 %v587_v6 }
  0x21   :  { %400 = vmatpush.bf16.msra.mxu1 %v595_v22  ;;  %663 = vmatpush.bf16.msra.mxu3 %v595_v22 }
  0x22   :  { %209 = vmatpush.bf16.msra.mxu0 %v586_v7  ;;  %656 = vmatpush.bf16.msra.mxu2 %v586_v7 }
  0x25   :  { %210 = vmatmul.bf16.vlgmr.msra.gmra.mxu0 %v578_v8  ;;  %230 = vmatmul.bf16.vlgmr.msra.gmra.mxu2 %v582_v9 }
  0x26   :  { %401 = vmatpush.bf16.msra.mxu1 %v594_v23  ;;  %664 = vmatpush.bf16.msra.mxu3 %v594_v23 }
  0x35   :  { %215 = vmatmul.bf16.gmra.mxu0 %v579_v10  ;;  %235 = vmatmul.bf16.gmra.mxu2 %v583_v11 }
  0x45   :  { %220 = vmatmul.bf16.gmra.mxu0 %v580_v16  ;;  %240 = vmatmul.bf16.gmra.mxu2 %v584_v17 }
  0x55   :  { %225 = vmatmul.bf16.gmra.mxu0 %v581_v19  ;;  %245 = vmatmul.bf16.gmra.mxu2 %v585_v20 }
  0xa2   :  { %v211_v24 = vpop.f32.mrf.mxu0 }
  0xa3   :  { %v302_v26 = vmax.f32 %v211_v24, 0.0 }
  0xa8   :  { %v231_v25 = vpop.f32.mrf.mxu2 }
  0xa9   :  { %v310_v31 = vmax.f32 %v231_v25, 0.0 }
  0xaa   :  { %v213_v27 = vpop.f32.mrf.mxu0 }
  0xab   :  { %v303_v28 = vmax.f32 %v213_v27, 0.0 }
  0xad   :  { %v318_v29 = vpack.c.bf16 %v303_v28, %v302_v26 }
  0xaf   :  { %402 = vmatmul.bf16.vlgmr.msra.gmra.mxu1 %v318_v29 }
  0xb0   :  { %v233_v30 = vpop.f32.mrf.mxu2 }
  0xb1   :  { %v311_v32 = vmax.f32 %v233_v30, 0.0 }
  0xb2   :  { %v216_v33 = vpop.f32.mrf.mxu0 }
  0xb3   :  { %v322_v34 = vpack.c.bf16 %v311_v32, %v310_v31  ;;  %v304_v36 = vmax.f32 %v216_v33, 0.0 }
  0xb5   :  { %422 = vmatmul.bf16.vlgmr.msra.gmra.mxu3 %v322_v34 }
  0xb8   :  { %v236_v35 = vpop.f32.mrf.mxu2 }
  0xb9   :  { %v312_v41 = vmax.f32 %v236_v35, 0.0 }
  0xba   :  { %v218_v37 = vpop.f32.mrf.mxu0 }
  0xbb   :  { %v305_v38 = vmax.f32 %v218_v37, 0.0 }
  0xbd   :  { %v319_v39 = vpack.c.bf16 %v305_v38, %v304_v36 }
  0xbf   :  { %407 = vmatmul.bf16.gmra.mxu1 %v319_v39 }
  0xc0   :  { %v238_v40 = vpop.f32.mrf.mxu2 }
  0xc1   :  { %v313_v42 = vmax.f32 %v238_v40, 0.0 }
  0xc2   :  { %v221_v43 = vpop.f32.mrf.mxu0 }
  0xc3   :  { %v323_v44 = vpack.c.bf16 %v313_v42, %v312_v41  ;;  %v306_v46 = vmax.f32 %v221_v43, 0.0 }
  0xc5   :  { %427 = vmatmul.bf16.gmra.mxu3 %v323_v44 }
  0xc8   :  { %v241_v45 = vpop.f32.mrf.mxu2 }
  0xc9   :  { %v314_v51 = vmax.f32 %v241_v45, 0.0 }
  0xca   :  { %v223_v47 = vpop.f32.mrf.mxu0 }
  0xcb   :  { %v307_v48 = vmax.f32 %v223_v47, 0.0 }
  0xcd   :  { %v320_v49 = vpack.c.bf16 %v307_v48, %v306_v46 }
  0xcf   :  { %412 = vmatmul.bf16.gmra.mxu1 %v320_v49 }
  0xd0   :  { %v243_v50 = vpop.f32.mrf.mxu2 }
  0xd1   :  { %v315_v52 = vmax.f32 %v243_v50, 0.0 }
  0xd2   :  { %v226_v53 = vpop.f32.mrf.mxu0 }
  0xd3   :  { %v324_v54 = vpack.c.bf16 %v315_v52, %v314_v51  ;;  %v308_v56 = vmax.f32 %v226_v53, 0.0 }
  0xd5   :  { %432 = vmatmul.bf16.gmra.mxu3 %v324_v54 }
  0xd8   :  { %v246_v55 = vpop.f32.mrf.mxu2 }
  0xd9   :  { %v316_v61 = vmax.f32 %v246_v55, 0.0 }
  0xda   :  { %v228_v57 = vpop.f32.mrf.mxu0 }
  0xdb   :  { %v309_v58 = vmax.f32 %v228_v57, 0.0 }
  0xdd   :  { %v321_v59 = vpack.c.bf16 %v309_v58, %v308_v56 }
  0xdf   :  { %417 = vmatmul.bf16.gmra.mxu1 %v321_v59 }
  0xe0   :  { %v248_v60 = vpop.f32.mrf.mxu2 }
  0xe1   :  { %v317_v62 = vmax.f32 %v248_v60, 0.0 }
  0xe3   :  { %v325_v63 = vpack.c.bf16 %v317_v62, %v316_v61 }
  0xe5   :  { %437 = vmatmul.bf16.gmra.mxu3 %v325_v63 }
 0x12c   :  { %v403_v0 = vpop.f32.mrf.mxu1 }
 0x12d   :  { %v404_v3 = vadd.f32 %v668_v1, %v403_v0 }
 0x134   :  { %v405_v2 = vpop.f32.mrf.mxu1 }
 0x135   :  { %v406_v4 = vadd.f32 %v668_v1, %v405_v2 }
 0x137   :  { %v605_v5 = vpack.c.bf16 %v406_v4, %v404_v3 }
 0x138   :  { %v423_v6 = vpop.f32.mrf.mxu3 }
 0x139   :  { %606 = vst [vmem:[%s805_s4] sm:$0xff] %v605_v5   ;;  %v424_v9 = vadd.f32 %v668_v1, %v423_v6 }
 0x13c   :  { %v408_v7 = vpop.f32.mrf.mxu1 }
 0x13d   :  { %v409_v13 = vadd.f32 %v668_v1, %v408_v7 }
 0x140   :  { %v425_v8 = vpop.f32.mrf.mxu3 }
 0x141   :  { %v426_v10 = vadd.f32 %v668_v1, %v425_v8 }
 0x143   :  { %v625_v11 = vpack.c.bf16 %v426_v10, %v424_v9 }
 0x144   :  { %v410_v12 = vpop.f32.mrf.mxu1 }
 0x145   :  { %645 = vst [vmem:[%s805_s4 + $0x20] sm:$0xff] %v625_v11   ;;  %v411_v14 = vadd.f32 %v668_v1, %v410_v12 }
 0x147   :  { %v610_v15 = vpack.c.bf16 %v411_v14, %v409_v13 }
 0x148   :  { %v428_v16 = vpop.f32.mrf.mxu3 }
 0x149   :  { %642 = vst [vmem:[%s805_s4 + $0x8] sm:$0xff] %v610_v15   ;;  %v429_v19 = vadd.f32 %v668_v1, %v428_v16 }
 0x14c   :  { %v413_v17 = vpop.f32.mrf.mxu1 }
 0x14d   :  { %v414_v23 = vadd.f32 %v668_v1, %v413_v17 }
 0x150   :  { %v430_v18 = vpop.f32.mrf.mxu3 }
 0x151   :  { %v431_v20 = vadd.f32 %v668_v1, %v430_v18 }
 0x153   :  { %v630_v21 = vpack.c.bf16 %v431_v20, %v429_v19 }
 0x154   :  { %v415_v22 = vpop.f32.mrf.mxu1 }
 0x155   :  { %646 = vst [vmem:[%s805_s4 + $0x28] sm:$0xff] %v630_v21   ;;  %v416_v24 = vadd.f32 %v668_v1, %v415_v22 }
 0x157   :  { %v615_v25 = vpack.c.bf16 %v416_v24, %v414_v23 }
 0x158   :  { %v433_v26 = vpop.f32.mrf.mxu3 }
 0x159   :  { %643 = vst [vmem:[%s805_s4 + $0x10] sm:$0xff] %v615_v25   ;;  %v434_v29 = vadd.f32 %v668_v1, %v433_v26 }
 0x15c   :  { %v418_v27 = vpop.f32.mrf.mxu1 }
 0x15d   :  { %v419_v33 = vadd.f32 %v668_v1, %v418_v27 }
 0x160   :  { %v435_v28 = vpop.f32.mrf.mxu3 }
 0x161   :  { %v436_v30 = vadd.f32 %v668_v1, %v435_v28 }
 0x163   :  { %v635_v31 = vpack.c.bf16 %v436_v30, %v434_v29 }
 0x164   :  { %v420_v32 = vpop.f32.mrf.mxu1 }
 0x165   :  { %647 = vst [vmem:[%s805_s4 + $0x30] sm:$0xff] %v635_v31   ;;  %v421_v34 = vadd.f32 %v668_v1, %v420_v32 }
 0x167   :  { %v620_v35 = vpack.c.bf16 %v421_v34, %v419_v33 }
 0x168   :  { %v438_v36 = vpop.f32.mrf.mxu3 }
 0x169   :  { %644 = vst [vmem:[%s805_s4 + $0x18] sm:$0xff] %v620_v35   ;;  %v439_v38 = vadd.f32 %v668_v1, %v438_v36 }
 0x170   :  { %v440_v37 = vpop.f32.mrf.mxu3 }
 0x171   :  { %v441_v39 = vadd.f32 %v668_v1, %v440_v37 }
 0x173   :  { %v640_v40 = vpack.c.bf16 %v441_v39, %v439_v38 }
 0x175   :  { %648 = vst [vmem:[%s805_s4 + $0x38] sm:$0xff] %v640_v40  }
 0x176   :  { %479 = vsyncpa [#allocation4], 1 }

// kernel: gnn_forward.5
= control target key start
LH: loop header
LB: loop body
LE: loop exit
PB: predicated region body
PF: predicated region fallthrough
CT: control target
= control target key end

     0   :  { %s1272_s1 = inlined_call_operand.vmem [shape: bf16[128,128], index: 1, kind: input, shape index: {}]   ;;  %s1273_s0 = inlined_call_operand.vmem [shape: bf16[128,128], index: 0, kind: input, shape index: {}]   ;;  %s1274_s2 = inlined_call_operand.vmem [shape: bf16[128,128], index: 2, kind: input, shape index: {}]   ;;  %s1275_s3 = inlined_call_operand.vmem [shape: f32[1,128], index: 3, kind: input, shape index: {}]   ;;  %s1276_s5 = inlined_call_operand.vmem [shape: bf16[128,128], index: 5, kind: output, shape index: {1}]   ;;  %s1277_s4 = inlined_call_operand.vmem [shape: f32[128,128], index: 4, kind: output, shape index: {0}]  }
   0x1   :  { %v814_v0 = vld [vmem:[%s1272_s1 + $0x38] sm:$0xff]  ;;  %v813_v1 = vld [vmem:[%s1272_s1 + $0x30] sm:$0xff]  ;;  %v812_v2 = vld [vmem:[%s1272_s1 + $0x28] sm:$0xff] }
   0x2   :  { %188 = vmatpush.bf16.msra.mxu0 %v814_v0  ;;  %870 = vmatpush.bf16.msra.mxu2 %v814_v0  ;;  %v811_v3 = vld [vmem:[%s1272_s1 + $0x20] sm:$0xff]  ;;  %v810_v4 = vld [vmem:[%s1272_s1 + $0x18] sm:$0xff]  ;;  %v809_v5 = vld [vmem:[%s1272_s1 + $0x10] sm:$0xff] }
   0x3   :  { %v808_v6 = vld [vmem:[%s1272_s1 + $0x8] sm:$0xff]  ;;  %v807_v7 = vld [vmem:[%s1272_s1] sm:$0xff]  ;;  %v822_v12 = vld [vmem:[%s1274_s2 + $0x38] sm:$0xff] }
   0x4   :  { %v799_v8 = vld [vmem:[%s1273_s0] sm:$0xff]  ;;  %v800_v10 = vld [vmem:[%s1273_s0 + $0x8] sm:$0xff]  ;;  %452 = vmatpush.bf16.msra.mxu1 %v822_v12  ;;  %v821_v13 = vld [vmem:[%s1274_s2 + $0x30] sm:$0xff]  ;;  %878 = vmatpush.bf16.msra.mxu3 %v822_v12 }
   0x5   :  { %v803_v9 = vld [vmem:[%s1273_s0 + $0x20] sm:$0xff]  ;;  %v804_v11 = vld [vmem:[%s1273_s0 + $0x28] sm:$0xff]  ;;  %v801_v16 = vld [vmem:[%s1273_s0 + $0x10] sm:$0xff] }
   0x6   :  { %189 = vmatpush.bf16.msra.mxu0 %v813_v1  ;;  %871 = vmatpush.bf16.msra.mxu2 %v813_v1  ;;  %v820_v14 = vld [vmem:[%s1274_s2 + $0x28] sm:$0xff]  ;;  %v819_v15 = vld [vmem:[%s1274_s2 + $0x20] sm:$0xff]  ;;  %v805_v17 = vld [vmem:[%s1273_s0 + $0x30] sm:$0xff] }
   0x7   :  { %v802_v18 = vld [vmem:[%s1273_s0 + $0x18] sm:$0xff]  ;;  %v817_v21 = vld [vmem:[%s1274_s2 + $0x10] sm:$0xff]  ;;  %v816_v22 = vld [vmem:[%s1274_s2 + $0x8] sm:$0xff] }
   0x8   :  { %453 = vmatpush.bf16.msra.mxu1 %v821_v13  ;;  %879 = vmatpush.bf16.msra.mxu3 %v821_v13  ;;  %v806_v19 = vld [vmem:[%s1273_s0 + $0x38] sm:$0xff]  ;;  %v815_v23 = vld [vmem:[%s1274_s2] sm:$0xff] }
   0x9   :  { %v818_v20 = vld [vmem:[%s1274_s2 + $0x18] sm:$0xff] }
   0xa   :  { %190 = vmatpush.bf16.msra.mxu0 %v812_v2  ;;  %872 = vmatpush.bf16.msra.mxu2 %v812_v2 }
   0xc   :  { %454 = vmatpush.bf16.msra.mxu1 %v820_v14  ;;  %880 = vmatpush.bf16.msra.mxu3 %v820_v14 }
   0xe   :  { %191 = vmatpush.bf16.msra.mxu0 %v811_v3  ;;  %873 = vmatpush.bf16.msra.mxu2 %v811_v3 }
  0x10   :  { %455 = vmatpush.bf16.msra.mxu1 %v819_v15  ;;  %881 = vmatpush.bf16.msra.mxu3 %v819_v15 }
  0x12   :  { %192 = vmatpush.bf16.msra.mxu0 %v810_v4  ;;  %874 = vmatpush.bf16.msra.mxu2 %v810_v4 }
  0x14   :  { %456 = vmatpush.bf16.msra.mxu1 %v818_v20  ;;  %882 = vmatpush.bf16.msra.mxu3 %v818_v20 }
  0x16   :  { %193 = vmatpush.bf16.msra.mxu0 %v809_v5  ;;  %875 = vmatpush.bf16.msra.mxu2 %v809_v5 }
  0x18   :  { %457 = vmatpush.bf16.msra.mxu1 %v817_v21  ;;  %883 = vmatpush.bf16.msra.mxu3 %v817_v21 }
  0x1a   :  { %194 = vmatpush.bf16.msra.mxu0 %v808_v6  ;;  %876 = vmatpush.bf16.msra.mxu2 %v808_v6 }
  0x1c   :  { %458 = vmatpush.bf16.msra.mxu1 %v816_v22  ;;  %884 = vmatpush.bf16.msra.mxu3 %v816_v22 }
  0x1e   :  { %195 = vmatpush.bf16.msra.mxu0 %v807_v7  ;;  %877 = vmatpush.bf16.msra.mxu2 %v807_v7 }
  0x20   :  { %459 = vmatpush.bf16.msra.mxu1 %v815_v23  ;;  %885 = vmatpush.bf16.msra.mxu3 %v815_v23 }
  0x21   :  { %196 = vmatmul.bf16.vlgmr.msra.gmra.mxu0 %v799_v8  ;;  %216 = vmatmul.bf16.vlgmr.msra.gmra.mxu2 %v803_v9 }
  0x31   :  { %201 = vmatmul.bf16.gmra.mxu0 %v800_v10  ;;  %221 = vmatmul.bf16.gmra.mxu2 %v804_v11 }
  0x41   :  { %206 = vmatmul.bf16.gmra.mxu0 %v801_v16  ;;  %226 = vmatmul.bf16.gmra.mxu2 %v805_v17 }
  0x51   :  { %211 = vmatmul.bf16.gmra.mxu0 %v802_v18  ;;  %231 = vmatmul.bf16.gmra.mxu2 %v806_v19 }
  0x9e   :  { %v197_v24 = vpop.f32.mrf.mxu0 }
  0x9f   :  { %v288_v25 = vmax.f32 %v197_v24, 0.0 }
  0xa1   :  { %v304_v28 = vpack.c.bf16 %v288_v25, %v288_v25 }
  0xa3   :  { %v372_v33 = vunpack.c.l.b16 %v304_v28 }
  0xa4   :  { %v217_v26 = vpop.f32.mrf.mxu2 }
  0xa5   :  { %v296_v30 = vmax.f32 %v217_v26, 0.0 }
  0xa6   :  { %v199_v27 = vpop.f32.mrf.mxu0 }
  0xa7   :  { %v289_v29 = vmax.f32 %v199_v27, 0.0  ;;  %v312_v36 = vpack.c.bf16 %v296_v30, %v296_v30 }
  0xa9   :  { %v305_v31 = vpack.c.bf16 %v289_v29, %v289_v29  ;;  %v826_v32 = vpack.c.bf16 %v289_v29, %v288_v25  ;;  %v380_v42 = vunpack.c.l.b16 %v312_v36 }
  0xab   :  { %827 = vst [vmem:[%s1276_s5] sm:$0xff] %v826_v32   ;;  %v373_v34 = vunpack.c.l.b16 %v305_v31 }
  0xac   :  { %v219_v35 = vpop.f32.mrf.mxu2 }
  0xad   :  { %v297_v37 = vmax.f32 %v219_v35, 0.0  ;;  %v388_v38 = vpack.c.b16 %v373_v34, %v372_v33 }
  0xae   :  { %v202_v39 = vpop.f32.mrf.mxu0 }
  0xaf   :  { %v313_v40 = vpack.c.bf16 %v297_v37, %v297_v37  ;;  %v846_v41 = vpack.c.bf16 %v297_v37, %v296_v30  ;;  %460 = vmatmul.bf16.vlgmr.msra.gmra.mxu1 %v388_v38  ;;  %v290_v44 = vmax.f32 %v202_v39, 0.0 }
  0xb1   :  { %866 = vst [vmem:[%s1276_s5 + $0x20] sm:$0xff] %v846_v41   ;;  %v381_v43 = vunpack.c.l.b16 %v313_v40  ;;  %v306_v48 = vpack.c.bf16 %v290_v44, %v290_v44  ;;  %v886_v40 = vld [vmem:[%s1275_s3] ss:$0 sm:$0xff] }
  0xb3   :  { %v392_v45 = vpack.c.b16 %v381_v43, %v380_v42  ;;  %v374_v53 = vunpack.c.l.b16 %v306_v48 }
  0xb4   :  { %v222_v46 = vpop.f32.mrf.mxu2 }
  0xb5   :  { %480 = vmatmul.bf16.vlgmr.msra.gmra.mxu3 %v392_v45  ;;  %v298_v50 = vmax.f32 %v222_v46, 0.0 }
  0xb6   :  { %v204_v47 = vpop.f32.mrf.mxu0 }
  0xb7   :  { %v291_v49 = vmax.f32 %v204_v47, 0.0  ;;  %v314_v56 = vpack.c.bf16 %v298_v50, %v298_v50 }
  0xb9   :  { %v307_v51 = vpack.c.bf16 %v291_v49, %v291_v49  ;;  %v831_v52 = vpack.c.bf16 %v291_v49, %v290_v44  ;;  %v382_v62 = vunpack.c.l.b16 %v314_v56 }
  0xbb   :  { %863 = vst [vmem:[%s1276_s5 + $0x8] sm:$0xff] %v831_v52   ;;  %v375_v54 = vunpack.c.l.b16 %v307_v51 }
  0xbc   :  { %v224_v55 = vpop.f32.mrf.mxu2 }
  0xbd   :  { %v299_v57 = vmax.f32 %v224_v55, 0.0  ;;  %v389_v58 = vpack.c.b16 %v375_v54, %v374_v53 }
  0xbe   :  { %v207_v59 = vpop.f32.mrf.mxu0 }
  0xbf   :  { %v315_v60 = vpack.c.bf16 %v299_v57, %v299_v57  ;;  %v851_v61 = vpack.c.bf16 %v299_v57, %v298_v50  ;;  %465 = vmatmul.bf16.gmra.mxu1 %v389_v58  ;;  %v292_v0 = vmax.f32 %v207_v59, 0.0 }
  0xc1   :  { %867 = vst [vmem:[%s1276_s5 + $0x28] sm:$0xff] %v851_v61   ;;  %v383_v63 = vunpack.c.l.b16 %v315_v60  ;;  %v308_v4 = vpack.c.bf16 %v292_v0, %v292_v0 }
  0xc3   :  { %v393_v1 = vpack.c.b16 %v383_v63, %v382_v62  ;;  %v376_v9 = vunpack.c.l.b16 %v308_v4 }
  0xc4   :  { %v227_v2 = vpop.f32.mrf.mxu2 }
  0xc5   :  { %485 = vmatmul.bf16.gmra.mxu3 %v393_v1  ;;  %v300_v6 = vmax.f32 %v227_v2, 0.0 }
  0xc6   :  { %v209_v3 = vpop.f32.mrf.mxu0 }
  0xc7   :  { %v293_v5 = vmax.f32 %v209_v3, 0.0  ;;  %v316_v12 = vpack.c.bf16 %v300_v6, %v300_v6 }
  0xc9   :  { %v309_v7 = vpack.c.bf16 %v293_v5, %v293_v5  ;;  %v836_v8 = vpack.c.bf16 %v293_v5, %v292_v0  ;;  %v384_v18 = vunpack.c.l.b16 %v316_v12 }
  0xcb   :  { %864 = vst [vmem:[%s1276_s5 + $0x10] sm:$0xff] %v836_v8   ;;  %v377_v10 = vunpack.c.l.b16 %v309_v7 }
  0xcc   :  { %v229_v11 = vpop.f32.mrf.mxu2 }
  0xcd   :  { %v301_v13 = vmax.f32 %v229_v11, 0.0  ;;  %v390_v14 = vpack.c.b16 %v377_v10, %v376_v9 }
  0xce   :  { %v212_v15 = vpop.f32.mrf.mxu0 }
  0xcf   :  { %v317_v16 = vpack.c.bf16 %v301_v13, %v301_v13  ;;  %v856_v17 = vpack.c.bf16 %v301_v13, %v300_v6  ;;  %470 = vmatmul.bf16.gmra.mxu1 %v390_v14  ;;  %v294_v20 = vmax.f32 %v212_v15, 0.0 }
  0xd1   :  { %868 = vst [vmem:[%s1276_s5 + $0x30] sm:$0xff] %v856_v17   ;;  %v385_v19 = vunpack.c.l.b16 %v317_v16  ;;  %v310_v24 = vpack.c.bf16 %v294_v20, %v294_v20 }
  0xd3   :  { %v394_v21 = vpack.c.b16 %v385_v19, %v384_v18  ;;  %v378_v29 = vunpack.c.l.b16 %v310_v24 }
  0xd4   :  { %v232_v22 = vpop.f32.mrf.mxu2 }
  0xd5   :  { %490 = vmatmul.bf16.gmra.mxu3 %v394_v21  ;;  %v302_v26 = vmax.f32 %v232_v22, 0.0 }
  0xd6   :  { %v214_v23 = vpop.f32.mrf.mxu0 }
  0xd7   :  { %v295_v25 = vmax.f32 %v214_v23, 0.0  ;;  %v318_v32 = vpack.c.bf16 %v302_v26, %v302_v26 }
  0xd9   :  { %v311_v27 = vpack.c.bf16 %v295_v25, %v295_v25  ;;  %v841_v28 = vpack.c.bf16 %v295_v25, %v294_v20  ;;  %v386_v37 = vunpack.c.l.b16 %v318_v32 }
  0xdb   :  { %865 = vst [vmem:[%s1276_s5 + $0x18] sm:$0xff] %v841_v28   ;;  %v379_v30 = vunpack.c.l.b16 %v311_v27 }
  0xdc   :  { %v234_v31 = vpop.f32.mrf.mxu2 }
  0xdd   :  { %v303_v33 = vmax.f32 %v234_v31, 0.0  ;;  %v391_v34 = vpack.c.b16 %v379_v30, %v378_v29 }
  0xdf   :  { %v319_v35 = vpack.c.bf16 %v303_v33, %v303_v33  ;;  %v861_v36 = vpack.c.bf16 %v303_v33, %v302_v26  ;;  %475 = vmatmul.bf16.gmra.mxu1 %v391_v34 }
  0xe1   :  { %869 = vst [vmem:[%s1276_s5 + $0x38] sm:$0xff] %v861_v36   ;;  %v387_v38 = vunpack.c.l.b16 %v319_v35 }
  0xe3   :  { %v395_v39 = vpack.c.b16 %v387_v38, %v386_v37 }
  0xe5   :  { %495 = vmatmul.bf16.gmra.mxu3 %v395_v39 }
 0x12c   :  { %v461_v41 = vpop.f32.mrf.mxu1 }
 0x12d   :  { %v1080_v42 = vadd.f32 %v886_v40, %v461_v41 }
 0x12f   :  { %501 = vmax.xlane.f32.xlu0 %v1080_v42 }
 0x134   :  { %v463_v43 = vpop.f32.mrf.mxu1 }
 0x135   :  { %v1083_v44 = vadd.f32 %v886_v40, %v463_v43 }
 0x137   :  { %503 = vmax.xlane.f32.xlu0 %v1083_v44 }
 0x138   :  { %v481_v45 = vpop.f32.mrf.mxu3 }
 0x139   :  { %v1086_v46 = vadd.f32 %v886_v40, %v481_v45 }
 0x13b   :  { %517 = vmax.xlane.f32.xlu2 %v1086_v46 }
 0x13c   :  { %v466_v47 = vpop.f32.mrf.mxu1 }
 0x13d   :  { %v1089_v48 = vadd.f32 %v886_v40, %v466_v47 }
 0x13f   :  { %505 = vmax.xlane.f32.xlu1 %v1089_v48 }
 0x140   :  { %v483_v49 = vpop.f32.mrf.mxu3 }
 0x141   :  { %v1092_v50 = vadd.f32 %v886_v40, %v483_v49 }
 0x143   :  { %519 = vmax.xlane.f32.xlu0 %v1092_v50 }
 0x144   :  { %v468_v51 = vpop.f32.mrf.mxu1 }
 0x145   :  { %v1095_v52 = vadd.f32 %v886_v40, %v468_v51 }
 0x147   :  { %507 = vmax.xlane.f32.xlu1 %v1095_v52 }
 0x148   :  { %v486_v53 = vpop.f32.mrf.mxu3 }
 0x149   :  { %v1098_v55 = vadd.f32 %v886_v40, %v486_v53 }
 0x14c   :  { %v471_v54 = vpop.f32.mrf.mxu1 }
 0x14d   :  { %v1100_v56 = vadd.f32 %v886_v40, %v471_v54 }
 0x14f   :  { %521 = vmax.xlane.f32.xlu1 %v1098_v55  ;;  %509 = vmax.xlane.f32.xlu2 %v1100_v56 }
 0x150   :  { %v488_v57 = vpop.f32.mrf.mxu3 }
 0x151   :  { %v1104_v59 = vadd.f32 %v886_v40, %v488_v57 }
 0x154   :  { %v473_v58 = vpop.f32.mrf.mxu1 }
 0x155   :  { %v1110_v63 = vadd.f32 %v886_v40, %v473_v58 }
 0x157   :  { %523 = vmax.xlane.f32.xlu2 %v1104_v59 }
 0x158   :  { %v491_v60 = vpop.f32.mrf.mxu3 }
 0x159   :  { %v1107_v61 = vadd.f32 %v886_v40, %v491_v60 }
 0x15b   :  { %525 = vmax.xlane.f32.xlu0 %v1107_v61 }
 0x15c   :  { %v476_v62 = vpop.f32.mrf.mxu1 }
 0x15d   :  { %v1113_v1 = vadd.f32 %v886_v40, %v476_v62 }
 0x15f   :  { %511 = vmax.xlane.f32.xlu2 %v1110_v63 }
 0x160   :  { %v493_v0 = vpop.f32.mrf.mxu3 }
 0x161   :  { %v1122_v6 = vadd.f32 %v886_v40, %v493_v0 }
 0x163   :  { %513 = vmax.xlane.f32.xlu0 %v1113_v1 }
 0x164   :  { %v478_v2 = vpop.f32.mrf.mxu1 }
 0x165   :  { %v1116_v3 = vadd.f32 %v886_v40, %v478_v2 }
 0x167   :  { %515 = vmax.xlane.f32.xlu1 %v1116_v3 }
 0x168   :  { %v496_v4 = vpop.f32.mrf.mxu3 }
 0x169   :  { %v1119_v5 = vadd.f32 %v886_v40, %v496_v4 }
 0x16b   :  { %529 = vmax.xlane.f32.xlu2 %v1119_v5 }
 0x16f   :  { %527 = vmax.xlane.f32.xlu1 %v1122_v6 }
 0x170   :  { %v498_v7 = vpop.f32.mrf.mxu3 }
 0x171   :  { %v1125_v8 = vadd.f32 %v886_v40, %v498_v7 }
 0x173   :  { %531 = vmax.xlane.f32.xlu0 %v1125_v8 }
 0x1a2   :  { %v1128_v9 = vpop.xlane.xlu0 %501 }
 0x1a3   :  { %v533_v10 = vsub.f32 %v1080_v42, %v1128_v9 }
 0x1a5   :  { %v549_v11 = vmul.f32 1.442695, %v533_v10 }
 0x1a7   :  { %887 = vpow2.f32 %v549_v11 }
 0x1aa   :  { %v1132_v12 = vpop.xlane.xlu0 %503 }
 0x1ab   :  { %v534_v13 = vsub.f32 %v1083_v44, %v1132_v12 }
 0x1ad   :  { %v888_v14 = vpop.eup %887  ;;  %v551_v15 = vmul.f32 1.442695, %v534_v13 }
 0x1ae   :  { %v1136_v16 = vpop.xlane.xlu2 %517  ;;  %581 = vadd.xlane.f32.xlu1 %v888_v14 }
 0x1af   :  { %889 = vpow2.f32 %v551_v15  ;;  %v541_v17 = vsub.f32 %v1086_v46, %v1136_v16 }
 0x1b1   :  { %v565_v18 = vmul.f32 1.442695, %v541_v17 }
 0x1b2   :  { %v1140_v19 = vpop.xlane.xlu1 %505 }
 0x1b3   :  { %891 = vpow2.f32 %v565_v18  ;;  %v535_v20 = vsub.f32 %v1089_v48, %v1140_v19 }
 0x1b5   :  { %v890_v21 = vpop.eup %889  ;;  %v553_v22 = vmul.f32 1.442695, %v535_v20 }
 0x1b6   :  { %v1144_v23 = vpop.xlane.xlu0 %519  ;;  %583 = vadd.xlane.f32.xlu2 %v890_v21 }
 0x1b7   :  { %v542_v24 = vsub.f32 %v1092_v50, %v1144_v23  ;;  %893 = vpow2.f32 %v553_v22 }
 0x1b9   :  { %v892_v25 = vpop.eup %891  ;;  %v567_v26 = vmul.f32 1.442695, %v542_v24 }
 0x1ba   :  { %v1148_v27 = vpop.xlane.xlu1 %507  ;;  %597 = vadd.xlane.f32.xlu0 %v892_v25 }
 0x1bb   :  { %895 = vpow2.f32 %v567_v26  ;;  %v536_v28 = vsub.f32 %v1095_v52, %v1148_v27 }
 0x1bd   :  { %v555_v29 = vmul.f32 1.442695, %v536_v28  ;;  %v894_v30 = vpop.eup %893 }
 0x1bf   :  { %897 = vpow2.f32 %v555_v29 }
 0x1c1   :  { %v896_v31 = vpop.eup %895 }
 0x1c2   :  { %v1152_v32 = vpop.xlane.xlu1 %521  ;;  %v1154_v33 = vpop.xlane.xlu2 %509  ;;  %599 = vadd.xlane.f32.xlu1 %v896_v31  ;;  %585 = vadd.xlane.f32.xlu0 %v894_v30 }
 0x1c3   :  { %v543_v34 = vsub.f32 %v1098_v55, %v1152_v32  ;;  %v537_v36 = vsub.f32 %v1100_v56, %v1154_v33 }
 0x1c5   :  { %v569_v35 = vmul.f32 1.442695, %v543_v34  ;;  %v898_v37 = vpop.eup %897  ;;  %v557_v38 = vmul.f32 1.442695, %v537_v36 }
 0x1c7   :  { %899 = vpow2.f32 %v569_v35 }
 0x1c8   :  { %901 = vpow2.f32 %v557_v38 }
 0x1ca   :  { %v1160_v39 = vpop.xlane.xlu2 %523  ;;  %587 = vadd.xlane.f32.xlu1 %v898_v37 }
 0x1cb   :  { %v544_v40 = vsub.f32 %v1104_v59, %v1160_v39 }
 0x1cd   :  { %v900_v41 = vpop.eup %899  ;;  %v571_v43 = vmul.f32 1.442695, %v544_v40 }
 0x1ce   :  { %v1164_v45 = vpop.xlane.xlu0 %525  ;;  %601 = vadd.xlane.f32.xlu2 %v900_v41  ;;  %v902_v54 = vpop.eup %901 }
 0x1cf   :  { %903 = vpow2.f32 %v571_v43  ;;  %v545_v47 = vsub.f32 %v1107_v61, %v1164_v45 }
 0x1d1   :  { %v573_v49 = vmul.f32 1.442695, %v545_v47 }
 0x1d2   :  { %v1168_v51 = vpop.xlane.xlu2 %511 }
 0x1d3   :  { %905 = vpow2.f32 %v573_v49  ;;  %v538_v53 = vsub.f32 %v1110_v63, %v1168_v51 }
 0x1d5   :  { %v904_v57 = vpop.eup %903  ;;  %v559_v58 = vmul.f32 1.442695, %v538_v53 }
 0x1d6   :  { %589 = vadd.xlane.f32.xlu2 %v902_v54  ;;  %603 = vadd.xlane.f32.xlu0 %v904_v57  ;;  %v1172_v60 = vpop.xlane.xlu0 %513 }
 0x1d7   :  { %907 = vpow2.f32 %v559_v58  ;;  %v539_v62 = vsub.f32 %v1113_v1, %v1172_v60 }
 0x1d9   :  { %v906_v0 = vpop.eup %905  ;;  %v561_v2 = vmul.f32 1.442695, %v539_v62 }
 0x1da   :  { %605 = vadd.xlane.f32.xlu1 %v906_v0  ;;  %v1176_v4 = vpop.xlane.xlu1 %515 }
 0x1db   :  { %909 = vpow2.f32 %v561_v2  ;;  %v540_v7 = vsub.f32 %v1116_v3, %v1176_v4 }
 0x1dd   :  { %v908_v10 = vpop.eup %907  ;;  %v563_v11 = vmul.f32 1.442695, %v540_v7 }
 0x1de   :  { %v1180_v13 = vpop.xlane.xlu2 %529  ;;  %591 = vadd.xlane.f32.xlu0 %v908_v10 }
 0x1df   :  { %911 = vpow2.f32 %v563_v11  ;;  %v547_v14 = vsub.f32 %v1119_v5, %v1180_v13 }
 0x1e1   :  { %v910_v15 = vpop.eup %909  ;;  %v577_v17 = vmul.f32 1.442695, %v547_v14 }
 0x1e2   :  { %v1184_v18 = vpop.xlane.xlu1 %527  ;;  %593 = vadd.xlane.f32.xlu1 %v910_v15 }
 0x1e3   :  { %913 = vpow2.f32 %v577_v17  ;;  %v546_v20 = vsub.f32 %v1122_v6, %v1184_v18 }
 0x1e5   :  { %v912_v21 = vpop.eup %911  ;;  %v575_v22 = vmul.f32 1.442695, %v546_v20 }
 0x1e6   :  { %595 = vadd.xlane.f32.xlu2 %v912_v21  ;;  %v1188_v24 = vpop.xlane.xlu0 %531 }
 0x1e7   :  { %915 = vpow2.f32 %v575_v22  ;;  %v548_v25 = vsub.f32 %v1125_v8, %v1188_v24 }
 0x1e9   :  { %v914_v26 = vpop.eup %913  ;;  %v579_v28 = vmul.f32 1.442695, %v548_v25 }
 0x1ea   :  { %609 = vadd.xlane.f32.xlu0 %v914_v26 }
 0x1eb   :  { %917 = vpow2.f32 %v579_v28 }
 0x1ed   :  { %v916_v29 = vpop.eup %915 }
 0x1ee   :  { %607 = vadd.xlane.f32.xlu2 %v916_v29 }
 0x1f1   :  { %v918_v30 = vpop.eup %917 }
 0x1f2   :  { %611 = vadd.xlane.f32.xlu1 %v918_v30 }
 0x221   :  { %v582_v31 = vpop.xlane.xlu1 %581 }
 0x222   :  { %919 = vlog2.f32 %v582_v31 }
 0x228   :  { %v920_v34 = vpop.eup %919 }
 0x229   :  { %v614_v35 = vmul.f32 0.6931472, %v920_v34  ;;  %v584_v36 = vpop.xlane.xlu2 %583 }
 0x22a   :  { %921 = vlog2.f32 %v584_v36 }
 0x22b   :  { %v645_v37 = vadd.f32 %v614_v35, %v1128_v9 }
 0x22d   :  { %v661_v38 = vsub.f32 %v1080_v42, %v645_v37  ;;  %v598_v40 = vpop.xlane.xlu0 %597 }
 0x22e   :  { %923 = vlog2.f32 %v598_v40 }
 0x22f   :  { %677 = vst [vmem:[%s1277_s4] sm:$0xff] %v661_v38 }
 0x230   :  { %v922_v41 = vpop.eup %921 }
 0x231   :  { %v616_v43 = vmul.f32 0.6931472, %v922_v41 }
 0x233   :  { %v646_v47 = vadd.f32 %v616_v43, %v1132_v12 }
 0x234   :  { %v924_v49 = vpop.eup %923 }
 0x235   :  { %v662_v53 = vsub.f32 %v1083_v44, %v646_v47  ;;  %v630_v54 = vmul.f32 0.6931472, %v924_v49  ;;  %v600_v57 = vpop.xlane.xlu1 %599  ;;  %v586_v58 = vpop.xlane.xlu0 %585 }
 0x236   :  { %925 = vlog2.f32 %v600_v57 }
 0x237   :  { %678 = vst [vmem:[%s1277_s4 + $0x8] sm:$0xff] %v662_v53  ;;  %v653_v42 = vadd.f32 %v630_v54, %v1136_v16  ;;  %927 = vlog2.f32 %v586_v58 }
 0x239   :  { %v669_v9 = vsub.f32 %v1086_v46, %v653_v42 }
 0x23b   :  { %685 = vst [vmem:[%s1277_s4 + $0x40] sm:$0xff] %v669_v9 }
 0x23c   :  { %v926_v12 = vpop.eup %925 }
 0x23d   :  { %v928_v62 = vpop.eup %927  ;;  %v632_v44 = vmul.f32 0.6931472, %v926_v12  ;;  %v588_v0 = vpop.xlane.xlu1 %587 }
 0x23e   :  { %v618_v2 = vmul.f32 0.6931472, %v928_v62  ;;  %929 = vlog2.f32 %v588_v0 }
 0x23f   :  { %v654_v7 = vadd.f32 %v632_v44, %v1144_v23 }
 0x240   :  { %v647_v10 = vadd.f32 %v618_v2, %v1140_v19 }
 0x241   :  { %v670_v11 = vsub.f32 %v1092_v50, %v654_v7  ;;  %v602_v16 = vpop.xlane.xlu2 %601 }
 0x242   :  { %v663_v14 = vsub.f32 %v1089_v48, %v647_v10  ;;  %931 = vlog2.f32 %v602_v16 }
 0x243   :  { %686 = vst [vmem:[%s1277_s4 + $0x48] sm:$0xff] %v670_v11 }
 0x244   :  { %v930_v46 = vpop.eup %929  ;;  %679 = vst [vmem:[%s1277_s4 + $0x10] sm:$0xff] %v663_v14 }
 0x245   :  { %v620_v15 = vmul.f32 0.6931472, %v930_v46 }
 0x247   :  { %v648_v23 = vadd.f32 %v620_v15, %v1148_v27 }
 0x248   :  { %v932_v17 = vpop.eup %931 }
 0x249   :  { %v664_v19 = vsub.f32 %v1095_v52, %v648_v23  ;;  %v634_v50 = vmul.f32 0.6931472, %v932_v17  ;;  %v590_v20 = vpop.xlane.xlu2 %589  ;;  %v604_v21 = vpop.xlane.xlu0 %603 }
 0x24a   :  { %933 = vlog2.f32 %v590_v20 }
 0x24b   :  { %680 = vst [vmem:[%s1277_s4 + $0x18] sm:$0xff] %v664_v19  ;;  %v655_v48 = vadd.f32 %v634_v50, %v1152_v32  ;;  %935 = vlog2.f32 %v604_v21 }
 0x24d   :  { %v671_v22 = vsub.f32 %v1098_v55, %v655_v48  ;;  %v606_v25 = vpop.xlane.xlu1 %605 }
 0x24e   :  { %937 = vlog2.f32 %v606_v25 }
 0x24f   :  { %687 = vst [vmem:[%s1277_s4 + $0x50] sm:$0xff] %v671_v22 }
 0x250   :  { %v934_v52 = vpop.eup %933 }
 0x251   :  { %v936_v27 = vpop.eup %935  ;;  %v622_v26 = vmul.f32 0.6931472, %v934_v52  ;;  %v592_v28 = vpop.xlane.xlu0 %591 }
 0x252   :  { %v636_v29 = vmul.f32 0.6931472, %v936_v27  ;;  %939 = vlog2.f32 %v592_v28 }
 0x253   :  { %v649_v30 = vadd.f32 %v622_v26, %v1154_v33 }
 0x254   :  { %v938_v31 = vpop.eup %937  ;;  %v656_v32 = vadd.f32 %v636_v29, %v1160_v39 }
 0x255   :  { %v665_v34 = vsub.f32 %v1100_v56, %v649_v30  ;;  %v638_v55 = vmul.f32 0.6931472, %v938_v31  ;;  %v594_v35 = vpop.xlane.xlu1 %593 }
 0x256   :  { %v672_v36 = vsub.f32 %v1104_v59, %v656_v32  ;;  %941 = vlog2.f32 %v594_v35 }
 0x257   :  { %681 = vst [vmem:[%s1277_s4 + $0x20] sm:$0xff] %v665_v34  ;;  %v657_v37 = vadd.f32 %v638_v55, %v1164_v45 }
 0x258   :  { %v940_v38 = vpop.eup %939  ;;  %688 = vst [vmem:[%s1277_s4 + $0x58] sm:$0xff] %v672_v36 }
 0x259   :  { %v673_v33 = vsub.f32 %v1107_v61, %v657_v37  ;;  %v624_v39 = vmul.f32 0.6931472, %v940_v38  ;;  %v596_v56 = vpop.xlane.xlu2 %595 }
 0x25a   :  { %943 = vlog2.f32 %v596_v56 }
 0x25b   :  { %689 = vst [vmem:[%s1277_s4 + $0x60] sm:$0xff] %v673_v33  ;;  %v650_v59 = vadd.f32 %v624_v39, %v1168_v51 }
 0x25c   :  { %v942_v40 = vpop.eup %941 }
 0x25d   :  { %v666_v41 = vsub.f32 %v1110_v63, %v650_v59  ;;  %v626_v45 = vmul.f32 0.6931472, %v942_v40  ;;  %v610_v43 = vpop.xlane.xlu0 %609 }
 0x25e   :  { %945 = vlog2.f32 %v610_v43 }
 0x25f   :  { %682 = vst [vmem:[%s1277_s4 + $0x28] sm:$0xff] %v666_v41  ;;  %v651_v61 = vadd.f32 %v626_v45, %v1172_v60 }
 0x260   :  { %v944_v47 = vpop.eup %943 }
 0x261   :  { %v667_v49 = vsub.f32 %v1113_v1, %v651_v61  ;;  %v628_v53 = vmul.f32 0.6931472, %v944_v47  ;;  %v608_v54 = vpop.xlane.xlu2 %607 }
 0x262   :  { %947 = vlog2.f32 %v608_v54 }
 0x263   :  { %683 = vst [vmem:[%s1277_s4 + $0x30] sm:$0xff] %v667_v49  ;;  %v652_v63 = vadd.f32 %v628_v53, %v1176_v4 }
 0x264   :  { %v946_v51 = vpop.eup %945 }
 0x265   :  { %v668_v57 = vsub.f32 %v1116_v3, %v652_v63  ;;  %v642_v58 = vmul.f32 0.6931472, %v946_v51  ;;  %v612_v42 = vpop.xlane.xlu1 %611 }
 0x266   :  { %949 = vlog2.f32 %v612_v42 }
 0x267   :  { %684 = vst [vmem:[%s1277_s4 + $0x38] sm:$0xff] %v668_v57  ;;  %v659_v1 = vadd.f32 %v642_v58, %v1180_v13 }
 0x268   :  { %v948_v60 = vpop.eup %947 }
 0x269   :  { %v675_v9 = vsub.f32 %v1119_v5, %v659_v1  ;;  %v640_v12 = vmul.f32 0.6931472, %v948_v60 }
 0x26b   :  { %691 = vst [vmem:[%s1277_s4 + $0x70] sm:$0xff] %v675_v9  ;;  %v658_v4 = vadd.f32 %v640_v12, %v1184_v18 }
 0x26c   :  { %v950_v3 = vpop.eup %949 }
 0x26d   :  { %v674_v62 = vsub.f32 %v1122_v6, %v658_v4  ;;  %v644_v44 = vmul.f32 0.6931472, %v950_v3 }
 0x26f   :  { %690 = vst [vmem:[%s1277_s4 + $0x68] sm:$0xff] %v674_v62  ;;  %v660_v13 = vadd.f32 %v644_v44, %v1188_v24 }
 0x271   :  { %v676_v0 = vsub.f32 %v1125_v8, %v660_v13 }
 0x273   :  { %692 = vst [vmem:[%s1277_s4 + $0x78] sm:$0xff] %v676_v0 }

</bundles_post_ra>
